<compile_context>
chip_gen: v7x
topology: tpu7x:2x2x1
jax: 0.10.0
libtpu: 0.0.40
codegen_flags: <defaults>
</compile_context>

<pallas_src>
import functools
import itertools

import numpy as np
import jax
import jax.numpy as jnp
from jax.experimental import pallas as pl
from jax.experimental.pallas import tpu as pltpu


def _round_up(x, m):
    return ((x + m - 1) // m) * m


def _matcher_cost_kernel(labels_ref, logits_ref, pboxes_ref, tboxes_t_ref, cost_ref,
                         *, class_cost, bbox_cost, giou_cost):
    Bb, Qt, C = logits_ref.shape
    Tp = labels_ref.shape[-1]
    full = (Bb, Qt, Tp)

    # ---- class term: class_cost * (-softmax(logits)[:, tgt_ids]) -----------------
    # softmax over classes; fold (-class_cost) and the normalization into a single
    # per-query scale so the MXU output is already the weighted class cost.
    logits = logits_ref[...]                                   # (Bb, Qt, C)
    m = jnp.max(logits, axis=-1, keepdims=True)
    e = jnp.exp(logits - m)
    inv_denom = pl.reciprocal(jnp.sum(e, axis=-1, keepdims=True), approx=False)
    scaled_probs = e * (inv_denom * (-class_cost))             # (Bb, Qt, C)

    # One-hot built in-kernel from the int32 labels (no B*T*C HBM tensor), laid out as
    # (C, T) so the MXU contraction needs no operand transpose.
    labels = labels_ref[...]                                   # (Bb, Tp) int32
    cls_iota = jax.lax.broadcasted_iota(jnp.int32, (Bb, C, Tp), 1)
    onehot_ct = (labels[:, None, :] == cls_iota).astype(jnp.float32)   # (Bb, C, Tp)
    class_term = jnp.einsum('bqc,bct->bqt', scaled_probs, onehot_ct,
                            preferred_element_type=jnp.float32)         # (Bb, Qt, Tp)

    # ---- box costs (L1 cdist + GIoU), xyxy boxes ----------------------------------
    pb = pboxes_ref[...]                                       # (Bb, Qt, 4)
    tbt = tboxes_t_ref[...]                                    # (Bb, 4, Tp)

    # un-broadcast slices (single-use terms)
    px0s = pb[:, :, 0:1]; py0s = pb[:, :, 1:2]; px1s = pb[:, :, 2:3]; py1s = pb[:, :, 3:4]
    tx0s = tbt[:, 0:1, :]; ty0s = tbt[:, 1:2, :]; tx1s = tbt[:, 2:3, :]; ty1s = tbt[:, 3:4, :]

    # hoisted broadcasts for multi-use coordinates (JAX does not CSE broadcast_in_dim)
    px0 = jnp.broadcast_to(px0s, full); py0 = jnp.broadcast_to(py0s, full)
    px1 = jnp.broadcast_to(px1s, full); py1 = jnp.broadcast_to(py1s, full)
    tx0 = jnp.broadcast_to(tx0s, full); ty0 = jnp.broadcast_to(ty0s, full)
    tx1 = jnp.broadcast_to(tx1s, full); ty1 = jnp.broadcast_to(ty1s, full)

    # L1 cdist
    cost_bbox = (jnp.abs(px0 - tx0) + jnp.abs(py0 - ty0)
                 + jnp.abs(px1 - tx1) + jnp.abs(py1 - ty1))    # (Bb, Qt, Tp)

    # generalized box IoU
    area_p = (px1s - px0s) * (py1s - py0s)                     # (Bb, Qt, 1)
    area_t = (tx1s - tx0s) * (ty1s - ty0s)                     # (Bb, 1, Tp)

    inter = (jnp.maximum(jnp.minimum(px1, tx1) - jnp.maximum(px0, tx0), 0.0)
             * jnp.maximum(jnp.minimum(py1, ty1) - jnp.maximum(py0, ty0), 0.0))
    union = area_p + area_t - inter
    iou = inter * pl.reciprocal(union, approx=False)
    enc = ((jnp.maximum(px1, tx1) - jnp.minimum(px0, tx0))
           * (jnp.maximum(py1, ty1) - jnp.minimum(py0, ty0)))
    giou = iou - (enc - union) * pl.reciprocal(enc, approx=False)

    cost_ref[...] = class_term + bbox_cost * cost_bbox - giou_cost * giou


def _pad_axis(x, target, axis, value=0):
    pad = target - x.shape[axis]
    if pad == 0:
        return x
    widths = [(0, 0)] * x.ndim
    widths[axis] = (0, pad)
    return jnp.pad(x, widths, constant_values=value)


def _pad_boxes_axis(boxes, target, axis):
    """Pad xyxy boxes along `axis` with valid dummy boxes [0,0,1,1] (avoids NaN GIoU)."""
    pad = target - boxes.shape[axis]
    if pad == 0:
        return boxes
    shape = list(boxes.shape)
    shape[axis] = pad
    dummy = jnp.broadcast_to(jnp.asarray([0.0, 0.0, 1.0, 1.0], boxes.dtype), shape)
    return jnp.concatenate([boxes, dummy], axis=axis)


def hungarian_cost_matrix(pred_logits, pred_boxes, tgt_labels, tgt_boxes,
                          class_cost=1.0, bbox_cost=5.0, giou_cost=2.0):
    """Computes the (B, Q, T) matching cost matrix with a Pallas TPU kernel."""
    B, Q, C = pred_logits.shape
    T = tgt_labels.shape[1]

    # Padding for clean (8, 128) tiling and lane-dense output.
    Tp = _round_up(T, 128)
    if Q <= 512:
        Qt = _round_up(Q, 8)
        Qp = Qt
    else:
        Qt = 256
        Qp = _round_up(Q, Qt)

    # Batch elements per grid step: amortize per-step pipeline overhead.
    Bb = B if B <= 8 else 8
    Bp = _round_up(B, Bb)

    logits_p = _pad_axis(_pad_axis(pred_logits.astype(jnp.float32), Qp, 1), Bp, 0)
    pboxes_p = _pad_boxes_axis(_pad_boxes_axis(pred_boxes.astype(jnp.float32), Qp, 1), Bp, 0)
    labels_p = _pad_axis(_pad_axis(tgt_labels.astype(jnp.int32), Tp, 1), Bp, 0)
    tboxes_p = _pad_boxes_axis(_pad_boxes_axis(tgt_boxes.astype(jnp.float32), Tp, 1), Bp, 0)
    tboxes_t_p = jnp.transpose(tboxes_p, (0, 2, 1))            # (Bp, 4, Tp): coords on sublanes

    kernel = functools.partial(_matcher_cost_kernel,
                               class_cost=float(class_cost),
                               bbox_cost=float(bbox_cost),
                               giou_cost=float(giou_cost))

    cost = pl.pallas_call(
        kernel,
        out_shape=jax.ShapeDtypeStruct((Bp, Qp, Tp), jnp.float32),
        grid=(Bp // Bb, Qp // Qt),
        in_specs=[
            pl.BlockSpec((Bb, Tp), lambda b, q: (b, 0)),           # labels (int32, tiny DMA)
            pl.BlockSpec((Bb, Qt, C), lambda b, q: (b, q, 0)),     # logits
            pl.BlockSpec((Bb, Qt, 4), lambda b, q: (b, q, 0)),     # pred boxes
            pl.BlockSpec((Bb, 4, Tp), lambda b, q: (b, 0, 0)),     # tgt boxes^T
        ],
        out_specs=pl.BlockSpec((Bb, Qt, Tp), lambda b, q: (b, q, 0)),
        compiler_params=pltpu.CompilerParams(
            dimension_semantics=("parallel", "parallel"),
            vmem_limit_bytes=48 * 1024 * 1024),
    )(labels_p, logits_p, pboxes_p, tboxes_t_p)

    # Slice off padded queries / targets / batch elements.
    return cost[:B, :Q, :T]


def _linear_sum_assignment_small(cost):
    """Exact minimum-cost assignment for tiny rectangular matrices (Q >= T)."""
    # TODO(synk): Hungarian algorithm (scipy linear_sum_assignment) is a sequential
    # combinatorial routine with no clean Pallas equivalent; solved exactly on host
    # by enumeration over the tiny cost matrix.
    Q, T = cost.shape
    best_perm, best_val = None, np.inf
    for perm in itertools.permutations(range(Q), T):
        val = sum(cost[perm[j], j] for j in range(T))
        if val < best_val:
            best_val, best_perm = val, perm
    pairs = sorted((best_perm[j], j) for j in range(T))
    rows = np.asarray([p[0] for p in pairs], dtype=np.int64)
    cols = np.asarray([p[1] for p in pairs], dtype=np.int64)
    return rows, cols


def hungarian_matcher(outputs, targets, class_cost=1.0, bbox_cost=5.0, giou_cost=2.0):
    """Mirrors HungarianMatcher.forward: returns a list of (row_idx, col_idx) per batch."""
    cost = hungarian_cost_matrix(outputs['pred_logits'], outputs['pred_boxes'],
                                 targets['labels'], targets['boxes'],
                                 class_cost, bbox_cost, giou_cost)
    cost_np = np.asarray(jax.block_until_ready(cost))
    return cost, [_linear_sum_assignment_small(cost_np[b]) for b in range(cost_np.shape[0])]


def _reference_cost(pred_logits, pred_boxes, tgt_labels, tgt_boxes,
                    class_cost, bbox_cost, giou_cost):
    """Pure-JAX reference for the cost matrix (for validation only)."""
    probs = jax.nn.softmax(pred_logits, axis=-1)                       # (B, Q, C)
    cost_class = -jnp.take_along_axis(
        probs, tgt_labels[:, None, :].astype(jnp.int32).repeat(probs.shape[1], 1), axis=2)
    cost_bbox = jnp.sum(jnp.abs(pred_boxes[:, :, None, :] - tgt_boxes[:, None, :, :]), -1)
    p, t = pred_boxes, tgt_boxes
    area_p = (p[..., 2] - p[..., 0]) * (p[..., 3] - p[..., 1])
    area_t = (t[..., 2] - t[..., 0]) * (t[..., 3] - t[..., 1])
    lt = jnp.maximum(p[:, :, None, :2], t[:, None, :, :2])
    rb = jnp.minimum(p[:, :, None, 2:], t[:, None, :, 2:])
    wh = jnp.clip(rb - lt, 0.0)
    inter = wh[..., 0] * wh[..., 1]
    union = area_p[:, :, None] + area_t[:, None, :] - inter
    iou = inter / union
    lt2 = jnp.minimum(p[:, :, None, :2], t[:, None, :, :2])
    rb2 = jnp.maximum(p[:, :, None, 2:], t[:, None, :, 2:])
    wh2 = jnp.clip(rb2 - lt2, 0.0)
    enc = wh2[..., 0] * wh2[..., 1]
    giou = iou - (enc - union) / enc
    return class_cost * cost_class + bbox_cost * cost_bbox + giou_cost * (-giou)


if __name__ == "__main__":
    key = jax.random.PRNGKey(0)
    B, Q, C, T = 2, 8, 16, 4   # batch, num_queries, num_classes, num_targets

    k1, k2, k3, k4, k5 = jax.random.split(key, 5)
    pred_logits = jax.random.normal(k1, (B, Q, C), dtype=jnp.float32)

    # valid xyxy boxes: x1 > x0, y1 > y0
    def make_boxes(k, n):
        ka, kb = jax.random.split(k)
        xy0 = jax.random.uniform(ka, (B, n, 2), minval=0.0, maxval=0.5)
        wh = jax.random.uniform(kb, (B, n, 2), minval=0.1, maxval=0.5)
        return jnp.concatenate([xy0, xy0 + wh], axis=-1).astype(jnp.float32)

    pred_boxes = make_boxes(k2, Q)
    tgt_boxes = make_boxes(k3, T)
    tgt_labels = jax.random.randint(k4, (B, T), 0, C)

    outputs = {'pred_logits': pred_logits, 'pred_boxes': pred_boxes}
    targets = {'labels': tgt_labels, 'boxes': tgt_boxes}

    cost, indices = hungarian_matcher(outputs, targets,
                                      class_cost=1.0, bbox_cost=5.0, giou_cost=2.0)
    cost = jax.block_until_ready(cost)

    ref = _reference_cost(pred_logits, pred_boxes, tgt_labels, tgt_boxes, 1.0, 5.0, 2.0)
    np.testing.assert_allclose(np.asarray(cost), np.asarray(ref), rtol=1e-4, atol=1e-5)

    print("KERNEL_OK")
</pallas_src>

<mosaic_0001>
module attributes {stable_mosaic.version = 11 : i64} {
  func.func @_matcher_cost_kernel(%arg0: i32, %arg1: i32, %arg2: memref<2x128xi32, #tpu.memory_space<vmem>>, %arg3: memref<2x8x16xf32, #tpu.memory_space<vmem>>, %arg4: memref<2x8x4xf32, #tpu.memory_space<vmem>>, %arg5: memref<2x4x128xf32, #tpu.memory_space<vmem>>, %arg6: memref<2x8x128xf32, #tpu.memory_space<vmem>>) attributes {dimension_semantics = [#tpu.dimension_semantics<parallel>, #tpu.dimension_semantics<parallel>], iteration_bounds = array<i64: 1, 1>, scalar_prefetch = 0 : i64, scratch_operands = 0 : i64, tpu.core_type = #tpu.core_type<tc>, window_params = [{transform_indices = @transform_0, window_bounds = array<i64: 2, 128>}, {transform_indices = @transform_1, window_bounds = array<i64: 2, 8, 16>}, {transform_indices = @transform_2, window_bounds = array<i64: 2, 8, 4>}, {transform_indices = @transform_3, window_bounds = array<i64: 2, 4, 128>}, {transform_indices = @transform_4, window_bounds = array<i64: 2, 8, 128>}]} {
    %c0 = arith.constant 0 : index
    %c0_0 = arith.constant 0 : index
    %c0_1 = arith.constant 0 : index
    %0 = vector.load %arg3[%c0, %c0_0, %c0_1] : memref<2x8x16xf32, #tpu.memory_space<vmem>>, vector<2x8x16xf32>
    %cst = arith.constant dense<0xFF800000> : vector<2x8xf32>
    %1 = vector.multi_reduction <maximumf>, %0, %cst [2] : vector<2x8x16xf32> to vector<2x8xf32>
    %2 = vector.shape_cast %1 : vector<2x8xf32> to vector<2x8x1xf32>
    %3 = vector.broadcast %2 : vector<2x8x1xf32> to vector<2x8x16xf32>
    %4 = arith.subf %0, %3 : vector<2x8x16xf32>
    %5 = math.exp %4 : vector<2x8x16xf32>
    %cst_2 = arith.constant dense<0.000000e+00> : vector<2x8xf32>
    %6 = vector.multi_reduction <add>, %5, %cst_2 [2] : vector<2x8x16xf32> to vector<2x8xf32>
    %7 = vector.shape_cast %6 : vector<2x8xf32> to vector<2x8x1xf32>
    %8 = tpu.reciprocal %7 : vector<2x8x1xf32> -> vector<2x8x1xf32>
    %cst_3 = arith.constant -1.000000e+00 : f32
    %9 = vector.broadcast %cst_3 : f32 to vector<2x8x1xf32>
    %10 = arith.mulf %8, %9 : vector<2x8x1xf32>
    %11 = vector.broadcast %10 : vector<2x8x1xf32> to vector<2x8x16xf32>
    %12 = arith.mulf %5, %11 : vector<2x8x16xf32>
    %c0_4 = arith.constant 0 : index
    %c0_5 = arith.constant 0 : index
    %13 = vector.load %arg2[%c0_4, %c0_5] : memref<2x128xi32, #tpu.memory_space<vmem>>, vector<2x128xi32>
    %14 = tpu.iota {dimensions = array<i32: 1>} : vector<2x16x128xi32>
    %15 = vector.shape_cast %13 : vector<2x128xi32> to vector<2x1x128xi32>
    %16 = vector.broadcast %15 : vector<2x1x128xi32> to vector<2x16x128xi32>
    %17 = arith.cmpi eq, %16, %14 : vector<2x16x128xi32>
    %18 = arith.extui %17 : vector<2x16x128xi1> to vector<2x16x128xi32>
    %19 = arith.sitofp %18 : vector<2x16x128xi32> to vector<2x16x128xf32>
    "tpu.trace_start"() <{level = 10 : i32, message = "bqc,bct->bqt"}> : () -> ()
    %cst_6 = arith.constant dense<0.000000e+00> : vector<2x8x128xf32>
    %20 = tpu.matmul %12, %19, %cst_6 {dimension_numbers = #tpu.dot_dimension_numbers<[2], [1], [1], [2], [0, 0, 0, 1, 1, 2], [0], [0]>} : vector<2x8x16xf32>, vector<2x16x128xf32>, vector<2x8x128xf32> -> vector<2x8x128xf32>
    "tpu.trace_stop"() : () -> ()
    %c0_7 = arith.constant 0 : index
    %c0_8 = arith.constant 0 : index
    %c0_9 = arith.constant 0 : index
    %21 = vector.load %arg4[%c0_7, %c0_8, %c0_9] : memref<2x8x4xf32, #tpu.memory_space<vmem>>, vector<2x8x4xf32>
    %c0_10 = arith.constant 0 : index
    %c0_11 = arith.constant 0 : index
    %c0_12 = arith.constant 0 : index
    %22 = vector.load %arg5[%c0_10, %c0_11, %c0_12] : memref<2x4x128xf32, #tpu.memory_space<vmem>>, vector<2x4x128xf32>
    %23 = vector.extract_strided_slice %21 {offsets = [0, 0, 0], sizes = [2, 8, 1], strides = [1, 1, 1]} : vector<2x8x4xf32> to vector<2x8x1xf32>
    %24 = vector.extract_strided_slice %21 {offsets = [0, 0, 1], sizes = [2, 8, 1], strides = [1, 1, 1]} : vector<2x8x4xf32> to vector<2x8x1xf32>
    %25 = vector.extract_strided_slice %21 {offsets = [0, 0, 2], sizes = [2, 8, 1], strides = [1, 1, 1]} : vector<2x8x4xf32> to vector<2x8x1xf32>
    %26 = vector.extract_strided_slice %21 {offsets = [0, 0, 3], sizes = [2, 8, 1], strides = [1, 1, 1]} : vector<2x8x4xf32> to vector<2x8x1xf32>
    %27 = vector.extract_strided_slice %22 {offsets = [0, 0, 0], sizes = [2, 1, 128], strides = [1, 1, 1]} : vector<2x4x128xf32> to vector<2x1x128xf32>
    %28 = vector.extract_strided_slice %22 {offsets = [0, 1, 0], sizes = [2, 1, 128], strides = [1, 1, 1]} : vector<2x4x128xf32> to vector<2x1x128xf32>
    %29 = vector.extract_strided_slice %22 {offsets = [0, 2, 0], sizes = [2, 1, 128], strides = [1, 1, 1]} : vector<2x4x128xf32> to vector<2x1x128xf32>
    %30 = vector.extract_strided_slice %22 {offsets = [0, 3, 0], sizes = [2, 1, 128], strides = [1, 1, 1]} : vector<2x4x128xf32> to vector<2x1x128xf32>
    %31 = vector.shape_cast %23 : vector<2x8x1xf32> to vector<2x8x1xf32>
    %32 = vector.broadcast %31 : vector<2x8x1xf32> to vector<2x8x128xf32>
    %33 = vector.shape_cast %24 : vector<2x8x1xf32> to vector<2x8x1xf32>
    %34 = vector.broadcast %33 : vector<2x8x1xf32> to vector<2x8x128xf32>
    %35 = vector.shape_cast %25 : vector<2x8x1xf32> to vector<2x8x1xf32>
    %36 = vector.broadcast %35 : vector<2x8x1xf32> to vector<2x8x128xf32>
    %37 = vector.shape_cast %26 : vector<2x8x1xf32> to vector<2x8x1xf32>
    %38 = vector.broadcast %37 : vector<2x8x1xf32> to vector<2x8x128xf32>
    %39 = vector.shape_cast %27 : vector<2x1x128xf32> to vector<2x1x128xf32>
    %40 = vector.broadcast %39 : vector<2x1x128xf32> to vector<2x8x128xf32>
    %41 = vector.shape_cast %28 : vector<2x1x128xf32> to vector<2x1x128xf32>
    %42 = vector.broadcast %41 : vector<2x1x128xf32> to vector<2x8x128xf32>
    %43 = vector.shape_cast %29 : vector<2x1x128xf32> to vector<2x1x128xf32>
    %44 = vector.broadcast %43 : vector<2x1x128xf32> to vector<2x8x128xf32>
    %45 = vector.shape_cast %30 : vector<2x1x128xf32> to vector<2x1x128xf32>
    %46 = vector.broadcast %45 : vector<2x1x128xf32> to vector<2x8x128xf32>
    %47 = arith.subf %32, %40 : vector<2x8x128xf32>
    %48 = math.absf %47 : vector<2x8x128xf32>
    %49 = arith.subf %34, %42 : vector<2x8x128xf32>
    %50 = math.absf %49 : vector<2x8x128xf32>
    %51 = arith.addf %48, %50 : vector<2x8x128xf32>
    %52 = arith.subf %36, %44 : vector<2x8x128xf32>
    %53 = math.absf %52 : vector<2x8x128xf32>
    %54 = arith.addf %51, %53 : vector<2x8x128xf32>
    %55 = arith.subf %38, %46 : vector<2x8x128xf32>
    %56 = math.absf %55 : vector<2x8x128xf32>
    %57 = arith.addf %54, %56 : vector<2x8x128xf32>
    %58 = arith.subf %25, %23 : vector<2x8x1xf32>
    %59 = arith.subf %26, %24 : vector<2x8x1xf32>
    %60 = arith.mulf %58, %59 : vector<2x8x1xf32>
    %61 = arith.subf %29, %27 : vector<2x1x128xf32>
    %62 = arith.subf %30, %28 : vector<2x1x128xf32>
    %63 = arith.mulf %61, %62 : vector<2x1x128xf32>
    %64 = arith.minimumf %36, %44 : vector<2x8x128xf32>
    %65 = arith.maximumf %32, %40 : vector<2x8x128xf32>
    %66 = arith.subf %64, %65 : vector<2x8x128xf32>
    %cst_13 = arith.constant 0.000000e+00 : f32
    %67 = vector.broadcast %cst_13 : f32 to vector<2x8x128xf32>
    %68 = arith.maximumf %66, %67 : vector<2x8x128xf32>
    %69 = arith.minimumf %38, %46 : vector<2x8x128xf32>
    %70 = arith.maximumf %34, %42 : vector<2x8x128xf32>
    %71 = arith.subf %69, %70 : vector<2x8x128xf32>
    %cst_14 = arith.constant 0.000000e+00 : f32
    %72 = vector.broadcast %cst_14 : f32 to vector<2x8x128xf32>
    %73 = arith.maximumf %71, %72 : vector<2x8x128xf32>
    %74 = arith.mulf %68, %73 : vector<2x8x128xf32>
    %75 = vector.broadcast %60 : vector<2x8x1xf32> to vector<2x8x128xf32>
    %76 = vector.broadcast %63 : vector<2x1x128xf32> to vector<2x8x128xf32>
    %77 = arith.addf %75, %76 : vector<2x8x128xf32>
    %78 = arith.subf %77, %74 : vector<2x8x128xf32>
    %79 = tpu.reciprocal %78 : vector<2x8x128xf32> -> vector<2x8x128xf32>
    %80 = arith.mulf %74, %79 : vector<2x8x128xf32>
    %81 = arith.maximumf %36, %44 : vector<2x8x128xf32>
    %82 = arith.minimumf %32, %40 : vector<2x8x128xf32>
    %83 = arith.subf %81, %82 : vector<2x8x128xf32>
    %84 = arith.maximumf %38, %46 : vector<2x8x128xf32>
    %85 = arith.minimumf %34, %42 : vector<2x8x128xf32>
    %86 = arith.subf %84, %85 : vector<2x8x128xf32>
    %87 = arith.mulf %83, %86 : vector<2x8x128xf32>
    %88 = arith.subf %87, %78 : vector<2x8x128xf32>
    %89 = tpu.reciprocal %87 : vector<2x8x128xf32> -> vector<2x8x128xf32>
    %90 = arith.mulf %88, %89 : vector<2x8x128xf32>
    %91 = arith.subf %80, %90 : vector<2x8x128xf32>
    %cst_15 = arith.constant 5.000000e+00 : f32
    %92 = vector.broadcast %cst_15 : f32 to vector<2x8x128xf32>
    %93 = arith.mulf %92, %57 : vector<2x8x128xf32>
    %94 = arith.addf %20, %93 : vector<2x8x128xf32>
    %cst_16 = arith.constant 2.000000e+00 : f32
    %95 = vector.broadcast %cst_16 : f32 to vector<2x8x128xf32>
    %96 = arith.mulf %95, %91 : vector<2x8x128xf32>
    %97 = arith.subf %94, %96 : vector<2x8x128xf32>
    %c0_17 = arith.constant 0 : index
    %c0_18 = arith.constant 0 : index
    %c0_19 = arith.constant 0 : index
    %98 = vector.load %arg6[%c0_17, %c0_18, %c0_19] : memref<2x8x128xf32, #tpu.memory_space<vmem>>, vector<2x8x128xf32>
    tpu.vector_store %arg6[%c0_17, %c0_18, %c0_19], %97 {strides = array<i32>} : memref<2x8x128xf32, #tpu.memory_space<vmem>>, vector<2x8x128xf32>,
    return
  }
  func.func @transform_0(%arg0: i32, %arg1: i32) -> (i32, i32) {
    %c0_i32 = arith.constant 0 : i32
    %c0_i32_0 = arith.constant 0 : i32
    return %arg0, %c0_i32 : i32, i32
  }
  func.func @transform_1(%arg0: i32, %arg1: i32) -> (i32, i32, i32) {
    %c0_i32 = arith.constant 0 : i32
    %c0_i32_0 = arith.constant 0 : i32
    return %arg0, %arg1, %c0_i32 : i32, i32, i32
  }
  func.func @transform_2(%arg0: i32, %arg1: i32) -> (i32, i32, i32) {
    %c0_i32 = arith.constant 0 : i32
    %c0_i32_0 = arith.constant 0 : i32
    return %arg0, %arg1, %c0_i32 : i32, i32, i32
  }
  func.func @transform_3(%arg0: i32, %arg1: i32) -> (i32, i32, i32) {
    %c0_i32 = arith.constant 0 : i32
    %c0_i32_0 = arith.constant 0 : i32
    %c0_i32_1 = arith.constant 0 : i32
    return %arg0, %c0_i32, %c0_i32_0 : i32, i32, i32
  }
  func.func @transform_4(%arg0: i32, %arg1: i32) -> (i32, i32, i32) {
    %c0_i32 = arith.constant 0 : i32
    %c0_i32_0 = arith.constant 0 : i32
    return %arg0, %arg1, %c0_i32 : i32, i32, i32
  }
}

</mosaic_0001>

<bundles_post_ra>
// kernel: tpu_custom_call.1
= control target key start
LH: loop header
LB: loop body
LE: loop exit
PB: predicated region body
PF: predicated region fallthrough
CT: control target
= control target key end

     0   :  { %vm20_vm0 = vcmask 130048   ;;  %s722_s0 = inlined_call_operand.vmem [shape: s32[2,128], index: 0, kind: input, shape index: {}]   ;;  %s723_s1 = inlined_call_operand.vmem [shape: f32[2,8,16], index: 1, kind: input, shape index: {}]   ;;  %s724_s2 = inlined_call_operand.vmem [shape: f32[2,8,4], index: 2, kind: input, shape index: {}]   ;;  %s725_s3 = inlined_call_operand.vmem [shape: f32[2,4,128], index: 3, kind: input, shape index: {}]   ;;  %s726_s4 = inlined_call_operand.hbm [shape: f32[2,8,128], index: 4, kind: output, shape index: {}]  }
   0x1   :  { %v18_v0 = vld [vmem:[%s723_s1] sm:$0xff]  ;;  %v19_v1 = vld [vmem:[%s723_s1 + $0x8] sm:$0xff] }
   0x2   :  { %v21_v2 = vsel %vm20_vm0, %v18_v0, -inf }
   0x3   :  { %9 = vsyncpa [#allocation3], 0  ;;  %22 = vmax.xlane.f32.xlu0 %v21_v2  ;;  %v24_v3 = vsel %vm20_vm0, %v19_v1, -inf  ;;  %v603_v4 = vld [vmem:[%s724_s2] sm:$0xff]  ;;  %s553_s21 = smov 2   ;;  %v46_v15 = vlaneseq  ;;  %v619_v20 = vld [vmem:[%s724_s2 + $0x8] sm:$0xff] }
   0x4   :  { %v554_v16 = vmov 1966171168   ;;  %v453_v23 = vld.sshfl [vmem:[%s722_s0] sm:$0x11 pattern:$0x75316420] }
   0x5   :  { %v58_v17 = vunpack.c.l.s4 %v554_v16  ;;  %v614_v18 = vshrl.u32 %v46_v15, 7  ;;  %v56_v29 = vcombine.high %v453_v23, %v453_v23  ;;  %s555_s2 = smov 127   ;;  %v556_v31 = vmov 0.0|0.0   ;;  %v653_v53 = vld [vmem:[%s725_s3 + $0x4] sm:$0xf] }
   0x6   :  { %484 = vmatprep.subr.bf16.mxu0 %v556_v31  ;;  %v557_v32 = vmov 1.0|1.0   ;;  %487 = vmatprep.subr.bf16.mxu1 %v556_v31  ;;  %v558_v34 = vmov 0   ;;  %vm559_vm4 = vmmov 0   ;;  %v560_v35 = vmov 0.0  }
   0x7   :  { %25 = vmax.xlane.f32.xlu0 %v24_v3  ;;  %v59_v19 = vunpack.c.0.s8 %v58_v17  ;;  %v626_v25 = vsub.s32 0, %v614_v18  ;;  %v48_v27 = vadd.s32 8, %v614_v18  ;;  %505 = vset.pattern.permute.xlu1 %v558_v34  ;;  %v561_v36 = vmov 1  }
   0x8   :  { %504 = vset.pattern.permute.xlu0 %v558_v34  ;;  %474 = vmatprep.mubr.msk.f32.mxu0 %vm559_vm4, %v560_v35  ;;  %v562_v37 = vmov 3   ;;  %v563_v38 = vmov 2   ;;  %v139_v55 = vsub.s32 1, %v614_v18  ;;  %v672_v2 = vsub.s32 2, %v614_v18 }
   0x9   :  { %v62_v22 = vsub.s32 %v59_v19, %v614_v18  ;;  %481 = vmatprep.mubr.msk.f32.mxu1 %vm559_vm4, %v560_v35  ;;  %v663_v58 = vrot.slane %v653_v53, %v626_v25 }
   0xa   :  { %v657_v56 = vrot.slane %v653_v53, %v139_v55 }
   0xb   :  { %v63_v24 = vrot.slane %v453_v23, %v62_v22  ;;  %v70_v30 = vrot.slane %v56_v29, %v62_v22 }
   0xd   :  { %v74_v28 = vrot.slane %v63_v24, %v626_v25  ;;  %v78_v33 = vrot.slane %v70_v30, %v626_v25 }
   0xf   :  { %vm79_vm1 = vcmp.eq.s32.totalorder %v74_v28, %v614_v18  ;;  %vm80_vm2 = vcmp.eq.s32.totalorder %v74_v28, %v48_v27  ;;  %vm81_vm5 = vcmp.eq.s32.totalorder %v78_v33, %v614_v18  ;;  %vm82_vm6 = vcmp.eq.s32.totalorder %v78_v33, %v48_v27 }
  0x10   :  { %vm485_vm3 = vmpackc.low %vm80_vm2, %vm79_vm1 }
  0x11   :  { %486 = vmatpush3.bf16.msk.msra.mxu0 %vm485_vm3, %v557_v32  ;;  %vm488_vm7 = vmpackc.low %vm82_vm6, %vm81_vm5 }
  0x12   :  { %489 = vmatpush3.bf16.msk.msra.mxu1 %vm488_vm7, %v557_v32 }
  0x1d   :  { %183 = vrot.lane.b32.xlu0 %v603_v4, %s553_s21 }
  0x21   :  { %97 = vperm.xlu0 %504, %v603_v4  }
  0x25   :  { %507 = vset.pattern.permute.xlu0 %v561_v36 }
  0x26   :  { %110 = vperm.xlu0 %507, %v619_v20  }
  0x2a   :  { %509 = vset.pattern.permute.xlu0 %v562_v37 }
  0x2b   :  { %122 = vperm.xlu0 %509, %v603_v4  }
  0x2f   :  { %512 = vset.pattern.permute.xlu0 %v563_v38 }
  0x90   :  { %v23_v5 = vpop.xlane.xlu0 %22 }
  0x91   :  { %v27_v6 = vsub.f32 %v18_v0, %v23_v5 }
  0x93   :  { %v29_v7 = vmul.f32 1.442695, %v27_v6 }
  0x94   :  { %v26_v8 = vpop.xlane.xlu0 %25 }
  0x95   :  { %513 = vpow2.f32 %v29_v7  ;;  %v28_v9 = vsub.f32 %v19_v1, %v26_v8 }
  0x97   :  { %v31_v10 = vmul.f32 1.442695, %v28_v9  ;;  %v93_v9 = vld [vmem:[%s725_s3] sm:$0xf]  ;;  %s564_s3 = smov [#allocation2]  }
  0x98   :  { %v184_v21 = vpop.permute.xlu0 %183  ;;  %v148_v15 = vrot.slane %v93_v9, %v672_v2  ;;  %s442_s28 = sshll.u32 %s564_s3, 4  ;;  %s443_s28 = int_to_ptr.vmem [resolvable:$true] %s442_s28 }
  0x99   :  { %515 = vpow2.f32 %v31_v10  ;;  %v189_v26 = vsub.f32 %v603_v4, %v184_v21  ;;  %v203_v10 = vrot.slane %v93_v9, 6  ;;  %s529_s29 = scalar_lea.vmem %s443_s28, 256  ;;  %p534_p1 = scmp.lt.s32.totalorder %s443_s28, %s443_s28 }
  0x9a   :  { %p530_p0 = scmp.ne.s32.totalorder %s443_s28, %s529_s29  ;;  %p535_p2 = scmp.lt.s32.totalorder %s529_s29, %s529_s29 }
  0x9c   :  { %p536_p3 = por %p535_p2, %p534_p1 }
  0x9e   :  { %p537_p4 = pnand %p536_p3, %p530_p0 }
  0x9f   :  { %v606_v11 = vpop.eup %513 }
  0xa0   :  { %v33_v12 = vsel %vm20_vm0, %v606_v11, 0.0  ;;  %v98_v54 = vpop.permute.xlu0 %97 }
  0xa1   :  { %34 = vadd.xlane.f32.xlu1 %v33_v12  ;;  %v207_v12 = vsub.f32 %v93_v9, %v203_v10 }
  0xa3   :  { %v610_v13 = vpop.eup %515  ;;  %v211_v23 = vrot.slane %v207_v12, 1 }
  0xa4   :  { %v36_v14 = vsel %vm20_vm0, %v610_v13, 0.0 }
  0xa5   :  { %37 = vadd.xlane.f32.xlu1 %v36_v14  ;;  %v659_v57 = vpop.permute.xlu0 %110  ;;  %v140_v14 = vrot.slane %v93_v9, %v139_v55  ;;  %v215_v28 = vmul.f32 %v211_v23, %v207_v12 }
  0xa6   :  { %v166_v59 = vsub.f32 %v659_v57, %v657_v56 }
  0xa7   :  { %v248_v30 = vrot.slane %v215_v28, %v672_v2 }
  0xa8   :  { %v168_v62 = vand.u32 2147483647, %v166_v59 }
  0xaa   :  { %v123_v19 = vpop.permute.xlu0 %122 }
  0xb6   :  { %185 = vrot.lane.b32.xlu1 %v619_v20, %s553_s21 }
  0xba   :  { %193 = vrot.lane.b32.xlu1 %v189_v26, %s555_s2 }
 0x12e   :  { %v35_v39 = vpop.xlane.xlu1 %34 }
 0x12f   :  { %517 = vrcp.f32 %v35_v39 }
 0x132   :  { %v38_v40 = vpop.xlane.xlu1 %37 }
 0x133   :  { %519 = vrcp.f32 %v38_v40 }
 0x136   :  { %v186_v41 = vpop.permute.xlu1 %185 }
 0x137   :  { %v190_v42 = vsub.f32 %v619_v20, %v186_v41 }
 0x139   :  { %v518_v43 = vpop.eup %517  ;;  %195 = vrot.lane.b32.xlu1 %v190_v42, %s555_s2 }
 0x13a   :  { %v41_v44 = vmul.f32 -1.0, %v518_v43  ;;  %v194_v49 = vpop.permute.xlu1 %193 }
 0x13b   :  { %v199_v50 = vmul.f32 %v194_v49, %v189_v26 }
 0x13c   :  { %v43_v45 = vmul.f32 %v606_v11, %v41_v44  ;;  %v155_v11 = vsub.s32 3, %v614_v18 }
 0x13d   :  { %v520_v46 = vpop.eup %519  ;;  %102 = vperm.xlu1 %505, %v619_v20  }
 0x13e   :  { %v42_v47 = vmul.f32 -1.0, %v520_v46  ;;  %475 = vmatmul.mubr.msk.f32.vlgmr.msra.gmra.mrb[0].mxu0 %vm20_vm0, %v43_v45  ;;  %v156_v16 = vrot.slane %v93_v9, %v155_v11  ;;  %v160_v49 = vrot.slane %v653_v53, %v155_v11 }
 0x140   :  { %v44_v48 = vmul.f32 %v610_v13, %v42_v47  ;;  %v132_v13 = vrot.slane %v93_v9, %v626_v25  ;;  %v225_v22 = vmin.f32 %v123_v19, %v156_v16  ;;  %v267_v34 = vmax.f32 %v123_v19, %v156_v16 }
 0x141   :  { %506 = vset.pattern.permute.xlu1 %v561_v36 }
 0x142   :  { %482 = vmatmul.mubr.msk.f32.vlgmr.msra.gmra.mrb[0].mxu1 %vm20_vm0, %v44_v48  ;;  %106 = vperm.xlu1 %506, %v603_v4   ;;  %v219_v17 = vmax.f32 %v98_v54, %v132_v13  ;;  %v263_v31 = vmin.f32 %v98_v54, %v132_v13  ;;  %v161_v40 = vsub.f32 %v98_v54, %v132_v13 }
 0x143   :  { %v177_v48 = vsub.f32 %v123_v19, %v156_v16 }
 0x144   :  { %v163_v43 = vand.u32 2147483647, %v161_v40 }
 0x146   :  { %508 = vset.pattern.permute.xlu1 %v563_v38 }
 0x147   :  { %114 = vperm.xlu1 %508, %v603_v4   ;;  %v676_v4 = vrot.slane %v653_v53, %v672_v2 }
 0x14b   :  { %118 = vperm.xlu1 %508, %v619_v20  }
 0x14f   :  { %510 = vset.pattern.permute.xlu1 %v562_v37 }
 0x150   :  { %126 = vperm.xlu1 %510, %v619_v20  }
 0x154   :  { %511 = vset.pattern.permute.xlu1 %v563_v38 }
 0x155   :  { %237 = vperm.xlu1 %511, %v199_v50   ;;  %v179_v50 = vand.u32 2147483647, %v177_v48 }
 0x1ab   :  { %v196_v51 = vpop.permute.xlu1 %195 }
 0x1ac   :  { %v200_v52 = vmul.f32 %v196_v51, %v190_v42 }
 0x1ae   :  { %242 = vperm.xlu0 %512, %v200_v52  }
 0x1bc   :  { %v667_v60 = vpop.permute.xlu1 %102 }
 0x1bd   :  { %v162_v61 = vsub.f32 %v667_v60, %v663_v58 }
 0x1bf   :  { %v164_v63 = vand.u32 2147483647, %v162_v61 }
 0x1c1   :  { %v107_v0 = vpop.permute.xlu1 %106  ;;  %v170_v1 = vadd.f32 %v168_v62, %v164_v63 }
 0x1c2   :  { %v227_v20 = vmax.f32 %v107_v0, %v140_v14  ;;  %v269_v32 = vmin.f32 %v107_v0, %v140_v14  ;;  %v165_v41 = vsub.f32 %v107_v0, %v140_v14 }
 0x1c4   :  { %v229_v27 = vsub.f32 %v225_v22, %v227_v20  ;;  %v271_v38 = vsub.f32 %v267_v34, %v269_v32  ;;  %v167_v44 = vand.u32 2147483647, %v165_v41  ;;  %v228_v20 = vmax.f32 %v659_v57, %v657_v56 }
 0x1c6   :  { %v115_v3 = vpop.permute.xlu1 %114  ;;  %v231_v18 = vmax.f32 %v229_v27, 0.0  ;;  %v169_v46 = vadd.f32 %v167_v44, %v163_v43  ;;  %v270_v27 = vmin.f32 %v659_v57, %v657_v56 }
 0x1c7   :  { %v217_v21 = vmin.f32 %v115_v3, %v148_v15  ;;  %v261_v33 = vmax.f32 %v115_v3, %v148_v15  ;;  %v171_v45 = vsub.f32 %v115_v3, %v148_v15 }
 0x1c9   :  { %v221_v26 = vsub.f32 %v217_v21, %v219_v17  ;;  %v265_v37 = vsub.f32 %v261_v33, %v263_v31  ;;  %v173_v47 = vand.u32 2147483647, %v171_v45  ;;  %v204_v17 = vrot.slane %v653_v53, 6 }
 0x1ca   :  { %v678_v5 = vpop.permute.xlu1 %118 }
 0x1cb   :  { %v172_v6 = vsub.f32 %v678_v5, %v676_v4  ;;  %v223_v29 = vmax.f32 %v221_v26, 0.0  ;;  %v273_v42 = vmul.f32 %v271_v38, %v265_v37  ;;  %v175_v52 = vadd.f32 %v173_v47, %v169_v46 }
 0x1cc   :  { %v208_v19 = vsub.f32 %v653_v53, %v204_v17  ;;  %v218_v21 = vmin.f32 %v678_v5, %v676_v4  ;;  %v264_v26 = vmin.f32 %v667_v60, %v663_v58  ;;  %v262_v53 = vmax.f32 %v678_v5, %v676_v4 }
 0x1cd   :  { %v174_v7 = vand.u32 2147483647, %v172_v6  ;;  %v233_v35 = vmul.f32 %v231_v18, %v223_v29  ;;  %v181_v63 = vadd.f32 %v179_v50, %v175_v52 }
 0x1ce   :  { %v212_v23 = vrot.slane %v208_v19, 1 }
 0x1cf   :  { %v176_v8 = vadd.f32 %v174_v7, %v170_v1  ;;  %v688_v24 = vpop.permute.xlu1 %126  ;;  %v283_v6 = vmul.f32 5.0, %v181_v63 }
 0x1d0   :  { %v178_v51 = vsub.f32 %v688_v24, %v160_v49  ;;  %v226_v22 = vmin.f32 %v688_v24, %v160_v49  ;;  %v268_v28 = vmax.f32 %v688_v24, %v160_v49 }
 0x1d2   :  { %v180_v54 = vand.u32 2147483647, %v178_v51  ;;  %v230_v18 = vsub.f32 %v226_v22, %v228_v20  ;;  %v272_v31 = vsub.f32 %v268_v28, %v270_v27 }
 0x1d4   :  { %v238_v25 = vpop.permute.xlu1 %237  ;;  %v182_v3 = vadd.f32 %v180_v54, %v176_v8  ;;  %v220_v8 = vmax.f32 %v667_v60, %v663_v58  ;;  %v232_v33 = vmax.f32 %v230_v18, 0.0 }
 0x1d5   :  { %v253_v36 = vadd.f32 %v248_v30, %v238_v25  ;;  %v216_v30 = vmul.f32 %v212_v23, %v208_v19  ;;  %v266_v25 = vsub.f32 %v262_v53, %v264_v26 }
 0x1d6   :  { %v284_v13 = vmul.f32 5.0, %v182_v3  ;;  %v222_v29 = vsub.f32 %v218_v21, %v220_v8 }
 0x1d7   :  { %v255_v39 = vsub.f32 %v253_v36, %v233_v35  ;;  %v252_v34 = vrot.slane %v216_v30, %v672_v2 }
 0x1d8   :  { %v224_v32 = vmax.f32 %v222_v29, 0.0 }
 0x1d9   :  { %521 = vrcp.f32 %v255_v39  ;;  %v275_v59 = vsub.f32 %v273_v42, %v255_v39 }
 0x1da   :  { %523 = vrcp.f32 %v273_v42  ;;  %v234_v58 = vmul.f32 %v232_v33, %v224_v32 }
 0x1e3   :  { %v522_v55 = vpop.eup %521 }
 0x1e4   :  { %v524_v61 = vpop.eup %523  ;;  %v259_v62 = vmul.f32 %v522_v55, %v233_v35  ;;  %v274_v35 = vmul.f32 %v272_v31, %v266_v25 }
 0x1e5   :  { %v279_v0 = vmul.f32 %v524_v61, %v275_v59 }
 0x1e6   :  { %525 = vrcp.f32 %v274_v35 }
 0x1e7   :  { %v281_v1 = vsub.f32 %v259_v62, %v279_v0 }
 0x1e9   :  { %v431_v10 = vmul.f32 2.0, %v281_v1 }
 0x1f0   :  { %v526_v57 = vpop.eup %525 }
 0x211   :  { %v354_v7 = vpop.f32.mrb[0].mxu0 }
 0x212   :  { %v355_v9 = vadd.f32 %v354_v7, %v283_v6  ;;  %v476_v12 = vpop.f32.mrb[1].mxu0 }
 0x214   :  { %v433_v11 = vsub.f32 %v355_v9, %v431_v10 }
 0x215   :  { %v427_v14 = vpop.f32.mrb[0].mxu1 }
 0x216   :  { %435 = vst [vmem:[#allocation2] sm:$0xff] %v433_v11  ;;  %v428_v15 = vadd.f32 %v427_v14, %v284_v13  ;;  %v483_v16 = vpop.f32.mrb[1].mxu1 }
 0x22d   :  { %v243_v36 = vpop.permute.xlu0 %242 }
 0x22e   :  { %v254_v60 = vadd.f32 %v252_v34, %v243_v36 }
 0x230   :  { %v256_v37 = vsub.f32 %v254_v60, %v234_v58 }
 0x232   :  { %527 = vrcp.f32 %v256_v37  ;;  %v276_v56 = vsub.f32 %v274_v35, %v256_v37 }
 0x234   :  { %v280_v24 = vmul.f32 %v526_v57, %v276_v56 }
 0x23c   :  { %v528_v4 = vpop.eup %527 }
 0x23d   :  { %v260_v5 = vmul.f32 %v528_v4, %v234_v58 }
 0x23f   :  { %v282_v38 = vsub.f32 %v260_v5, %v280_v24 }
 0x241   :  { %v432_v39 = vmul.f32 2.0, %v282_v38 }
 0x243   :  { %v434_v40 = vsub.f32 %v428_v15, %v432_v39 }
 0x245   :  { %436 = vst [vmem:[#allocation2 + $0x8] sm:$0xff] %v434_v40 }
 0x246   :  { %540 = shalt.err (!%p537_p4)
}
 0x247   :  { %s541_s6 = scalar_lea.hbm %s726_s4, 256 }
 0x248   :  { %p542_p5 = scmp.ne.s32.totalorder %s726_s4, %s541_s6  ;;  %p545_p6 = scmp.lt.u32.totalorder %s541_s6, %s726_s4 }
 0x24a   :  { %p547_p7 = pnand %p545_p6, %p542_p5 }
 0x24c   :  { %550 = shalt.err (!%p547_p7)
}
 0x24d   :  { %s565_s11 = smov 128   ;;  %s566_s12 = smov 8  }
 0x24e   :  { %448 = dma.vmem_to_hbm [thread:$0]  %s443_s28, 256, %s726_s4, [#allocation3], %s565_s11, %s565_s11, %s566_s12  }
 0x24f   :  { %551 = dma.done.wait [#allocation3], 256  }
 0x250   :  { %552 = vsyncadd [#allocation3], 4294967040 }
 0x251   :  { %452 = vsyncpa [#allocation3], 1 }

</bundles_post_ra>
